<compile_context>
chip_gen: v6e
topology: v6e:2x2x1
jax: 0.10.0
libtpu: 0.0.40
codegen_flags: <defaults>
</compile_context>

<pallas_src>
import jax
import jax.numpy as jnp
from jax.experimental import pallas as pl
from jax.experimental.pallas import tpu as pltpu

# Problem sizes (small, consistent with the module's forward)
N, H, W = 2, 16, 16
CIN, COUT = 4, 8
RATES = (6, 12, 18)
PAD = max(RATES)          # pad the input once to the largest dilation
EPS = 1e-5
S = N * H * W             # 512 spatial columns (lane axis)
K3 = 9 * CIN              # 36 im2col rows per branch


def aspp_kernel(p1_ref, p2_ref, p3_ref,
                w1_ref, b1_ref, w2_ref, b2_ref, w3_ref, b3_ref,
                wo_ref, bo_ref, out_ref):
    """Whole ASPP forward in one invocation.

    p*_ref : (36, 512)   im2col patch matrix for branch i (rows = tap*CIN + cin)
    w*_ref : (8, 36)     dilated-conv weight, rows = COUT, cols match p rows
    b*_ref : (8, 1)      dilated-conv bias (broadcast over lanes)
    wo_ref : (8, 24)     1x1 output conv weight (cols = concat channels)
    bo_ref : (8, 1)      1x1 output conv bias
    out_ref: (8, 512)    lane-dense output (COUT, N*H*W)
    """

    def branch_contrib(p_ref, w_ref, b_ref, idx):
        # Dilated 3x3 conv == one well-shaped matmul on the im2col matrix.
        y = jnp.dot(w_ref[...], p_ref[...],
                    preferred_element_type=jnp.float32)          # (COUT, S)
        y = jnp.maximum(y + b_ref[...], 0.0)                     # bias + ReLU
        # BatchNorm2d, training-mode batch stats per channel (sublane row),
        # reduced over the lane (spatial) axis -> XLU reduce (free slot).
        mean = jnp.mean(y, axis=1, keepdims=True)                # (COUT, 1)
        var = jnp.mean((y - mean) ** 2, axis=1, keepdims=True)   # biased variance
        inv_std = jax.lax.rsqrt(var + EPS)                       # (COUT, 1)
        # Fold the BN scale into this branch's slice of the 1x1 output weight:
        #   wo_i @ ((y - mean) * inv_std) == (wo_i * inv_std^T) @ y
        #                                    - (wo_i * inv_std^T) @ mean
        wo_i = wo_ref[:, idx * COUT:(idx + 1) * COUT]            # (COUT, COUT)
        scaled = wo_i * inv_std.T                                # column scaling
        contrib = jnp.dot(scaled, y, preferred_element_type=jnp.float32)  # (COUT,S)
        corr = jnp.dot(scaled, mean, preferred_element_type=jnp.float32)  # (COUT,1)
        return contrib, corr

    # Incremental accumulation: each branch's full-size tensors die before the
    # next branch is computed (only the (8,512) accumulator stays live).
    c1, k1 = branch_contrib(p1_ref, w1_ref, b1_ref, 0)
    acc = c1
    bias = bo_ref[...] - k1
    c2, k2 = branch_contrib(p2_ref, w2_ref, b2_ref, 1)
    acc = acc + c2
    bias = bias - k2
    c3, k3 = branch_contrib(p3_ref, w3_ref, b3_ref, 2)
    out_ref[...] = acc + c3 + (bias - k3)                        # lane-dense store


def im2col(x_pad, d):
    """Build the (9*CIN, N*H*W) patch matrix for a dilated 3x3 conv (wrapper/XLA).

    x_pad: (N, CIN, H+2*PAD, W+2*PAD), zero-padded NCHW input.
    Row order = tap-major (tap = kh*3 + kw), cin-minor.
    """
    base = PAD - d
    taps = []
    for kh in range(3):
        for kw in range(3):
            h0 = base + kh * d
            w0 = base + kw * d
            patch = x_pad[:, :, h0:h0 + H, w0:w0 + W]            # (N, CIN, H, W)
            patch = jnp.transpose(patch, (1, 0, 2, 3)).reshape(CIN, S)
            taps.append(patch)
    return jnp.concatenate(taps, axis=0)                         # (9*CIN, S)


def init_params(key):
    """Deterministic parameter init matching the module's _init_weights."""
    ks = jax.random.split(key, 8)

    def kaiming(k, shape, fan_in):
        return jax.random.normal(k, shape, jnp.float32) * jnp.sqrt(2.0 / fan_in)

    def bias(k, fan_in):
        bound = 1.0 / jnp.sqrt(fan_in)
        return jax.random.uniform(k, (COUT, 1), jnp.float32, -bound, bound)

    fan3 = CIN * 3 * 3
    w1 = kaiming(ks[0], (COUT, K3), fan3)
    w2 = kaiming(ks[1], (COUT, K3), fan3)
    w3 = kaiming(ks[2], (COUT, K3), fan3)
    b1, b2, b3 = bias(ks[3], fan3), bias(ks[4], fan3), bias(ks[5], fan3)

    fan1 = 3 * COUT                                  # 1x1 conv fan_in
    wo = kaiming(ks[6], (COUT, 3 * COUT), fan1)
    bo = bias(ks[7], fan1)
    return (w1, b1, w2, b2, w3, b3, wo, bo)


@jax.jit
def aspp_forward(x_nchw, params):
    w1, b1, w2, b2, w3, b3, wo, bo = params
    x = x_nchw.astype(jnp.float32)
    xp = jnp.pad(x, ((0, 0), (0, 0), (PAD, PAD), (PAD, PAD)))    # pad once

    # Wrapper-side im2col: ~220 KB total, trivial for HBM/VMEM.
    p1 = im2col(xp, RATES[0])
    p2 = im2col(xp, RATES[1])
    p3 = im2col(xp, RATES[2])

    vmem = pl.BlockSpec(memory_space=pltpu.MemorySpace.VMEM)
    out_flat = pl.pallas_call(
        aspp_kernel,
        out_shape=jax.ShapeDtypeStruct((COUT, S), jnp.float32),  # lane-dense (8,512)
        in_specs=[vmem] * 11,
        out_specs=vmem,
    )(p1, p2, p3, w1, b1, w2, b2, w3, b3, wo, bo)

    # (COUT, N*H*W) -> NCHW to match the PyTorch output convention.
    return jnp.transpose(out_flat.reshape(COUT, N, H, W), (1, 0, 2, 3))


def aspp_reference(x_nchw, params):
    """Pure-JAX reference (XLA convs) for a correctness cross-check."""
    w1, b1, w2, b2, w3, b3, wo, bo = params

    def branch(w2d, b, d):
        # (COUT, 9*CIN) rows: tap-major, cin-minor  ->  OIHW conv weight
        wk = jnp.transpose(w2d.reshape(COUT, 3, 3, CIN), (0, 3, 1, 2))
        y = jax.lax.conv_general_dilated(
            x_nchw.astype(jnp.float32), wk, window_strides=(1, 1),
            padding=((d, d), (d, d)), rhs_dilation=(d, d),
            dimension_numbers=("NCHW", "OIHW", "NCHW"),
            precision=jax.lax.Precision.HIGHEST)
        y = jnp.maximum(y + b.reshape(1, COUT, 1, 1), 0.0)
        mean = jnp.mean(y, axis=(0, 2, 3), keepdims=True)
        var = jnp.mean((y - mean) ** 2, axis=(0, 2, 3), keepdims=True)
        return (y - mean) * jax.lax.rsqrt(var + EPS)

    ys = jnp.concatenate([branch(w1, b1, RATES[0]),
                          branch(w2, b2, RATES[1]),
                          branch(w3, b3, RATES[2])], axis=1)     # (N, 3*COUT, H, W)
    out = jnp.einsum("nchw,oc->nohw", ys, wo,
                     precision=jax.lax.Precision.HIGHEST)
    return out + bo.reshape(1, COUT, 1, 1)


if __name__ == "__main__":
    key = jax.random.PRNGKey(0)
    k_x, k_p = jax.random.split(key)
    x = jax.random.normal(k_x, (N, CIN, H, W), jnp.float32)      # NCHW like PyTorch
    params = init_params(k_p)

    out = aspp_forward(x, params)
    jax.block_until_ready(out)
    assert out.shape == (N, COUT, H, W), out.shape
    assert jnp.all(jnp.isfinite(out))

    ref = aspp_reference(x, params)
    assert jnp.allclose(out, ref, atol=1e-3, rtol=1e-3), \
        float(jnp.max(jnp.abs(out - ref)))
    print("KERNEL_OK")
</pallas_src>

<mosaic_0001>
module attributes {stable_mosaic.version = 11 : i64} {
  func.func @aspp_kernel(%arg0: memref<36x512xf32, #tpu.memory_space<vmem>>, %arg1: memref<36x512xf32, #tpu.memory_space<vmem>>, %arg2: memref<36x512xf32, #tpu.memory_space<vmem>>, %arg3: memref<8x36xf32, #tpu.memory_space<vmem>>, %arg4: memref<8x1xf32, #tpu.memory_space<vmem>>, %arg5: memref<8x36xf32, #tpu.memory_space<vmem>>, %arg6: memref<8x1xf32, #tpu.memory_space<vmem>>, %arg7: memref<8x36xf32, #tpu.memory_space<vmem>>, %arg8: memref<8x1xf32, #tpu.memory_space<vmem>>, %arg9: memref<8x24xf32, #tpu.memory_space<vmem>>, %arg10: memref<8x1xf32, #tpu.memory_space<vmem>>, %arg11: memref<8x512xf32, #tpu.memory_space<vmem>>) attributes {dimension_semantics = [], scalar_prefetch = 0 : i64, scratch_operands = 0 : i64, tpu.core_type = #tpu.core_type<tc>} {
    %c0 = arith.constant 0 : index
    %c0_0 = arith.constant 0 : index
    %0 = vector.load %arg3[%c0, %c0_0] : memref<8x36xf32, #tpu.memory_space<vmem>>, vector<8x36xf32>
    %c0_1 = arith.constant 0 : index
    %c0_2 = arith.constant 0 : index
    %1 = vector.load %arg0[%c0_1, %c0_2] : memref<36x512xf32, #tpu.memory_space<vmem>>, vector<36x512xf32>
    %cst = arith.constant dense<0.000000e+00> : vector<8x512xf32>
    %2 = tpu.matmul %0, %1, %cst {dimension_numbers = #tpu.dot_dimension_numbers<[1], [0], [0], [1], [0, 0, 1, 1], [], []>} : vector<8x36xf32>, vector<36x512xf32>, vector<8x512xf32> -> vector<8x512xf32>
    %c0_3 = arith.constant 0 : index
    %c0_4 = arith.constant 0 : index
    %3 = vector.load %arg4[%c0_3, %c0_4] : memref<8x1xf32, #tpu.memory_space<vmem>>, vector<8x1xf32>
    %4 = vector.broadcast %3 : vector<8x1xf32> to vector<8x512xf32>
    %5 = arith.addf %2, %4 : vector<8x512xf32>
    %cst_5 = arith.constant 0.000000e+00 : f32
    %6 = vector.broadcast %cst_5 : f32 to vector<8x512xf32>
    %7 = arith.maximumf %5, %6 : vector<8x512xf32>
    %cst_6 = arith.constant dense<0.000000e+00> : vector<8xf32>
    %8 = vector.multi_reduction <add>, %7, %cst_6 [1] : vector<8x512xf32> to vector<8xf32>
    %9 = vector.shape_cast %8 : vector<8xf32> to vector<8x1xf32>
    %cst_7 = arith.constant 5.120000e+02 : f32
    %10 = vector.broadcast %cst_7 : f32 to vector<8x1xf32>
    %11 = arith.divf %9, %10 : vector<8x1xf32>
    %12 = vector.broadcast %11 : vector<8x1xf32> to vector<8x512xf32>
    %13 = arith.subf %7, %12 : vector<8x512xf32>
    %14 = arith.mulf %13, %13 : vector<8x512xf32>
    %cst_8 = arith.constant dense<0.000000e+00> : vector<8xf32>
    %15 = vector.multi_reduction <add>, %14, %cst_8 [1] : vector<8x512xf32> to vector<8xf32>
    %16 = vector.shape_cast %15 : vector<8xf32> to vector<8x1xf32>
    %cst_9 = arith.constant 5.120000e+02 : f32
    %17 = vector.broadcast %cst_9 : f32 to vector<8x1xf32>
    %18 = arith.divf %16, %17 : vector<8x1xf32>
    %cst_10 = arith.constant 9.99999974E-6 : f32
    %19 = vector.broadcast %cst_10 : f32 to vector<8x1xf32>
    %20 = arith.addf %18, %19 : vector<8x1xf32>
    %21 = math.rsqrt %20 : vector<8x1xf32>
    %c0_11 = arith.constant 0 : index
    %c0_12 = arith.constant 0 : index
    %22 = vector.load %arg9[%c0_11, %c0_12] : memref<8x24xf32, #tpu.memory_space<vmem>>, vector<8x8xf32>
    %23 = tpu.transpose %21, [1, 0] : vector<8x1xf32> -> vector<1x8xf32>
    %24 = vector.broadcast %23 : vector<1x8xf32> to vector<8x8xf32>
    %25 = arith.mulf %22, %24 : vector<8x8xf32>
    %cst_13 = arith.constant dense<0.000000e+00> : vector<8x512xf32>
    %26 = tpu.matmul %25, %7, %cst_13 {dimension_numbers = #tpu.dot_dimension_numbers<[1], [0], [0], [1], [0, 0, 1, 1], [], []>} : vector<8x8xf32>, vector<8x512xf32>, vector<8x512xf32> -> vector<8x512xf32>
    %cst_14 = arith.constant dense<0.000000e+00> : vector<8x1xf32>
    %27 = tpu.matmul %25, %11, %cst_14 {dimension_numbers = #tpu.dot_dimension_numbers<[1], [0], [0], [1], [0, 0, 1, 1], [], []>} : vector<8x8xf32>, vector<8x1xf32>, vector<8x1xf32> -> vector<8x1xf32>
    %c0_15 = arith.constant 0 : index
    %c0_16 = arith.constant 0 : index
    %28 = vector.load %arg10[%c0_15, %c0_16] : memref<8x1xf32, #tpu.memory_space<vmem>>, vector<8x1xf32>
    %29 = arith.subf %28, %27 : vector<8x1xf32>
    %c0_17 = arith.constant 0 : index
    %c0_18 = arith.constant 0 : index
    %30 = vector.load %arg5[%c0_17, %c0_18] : memref<8x36xf32, #tpu.memory_space<vmem>>, vector<8x36xf32>
    %c0_19 = arith.constant 0 : index
    %c0_20 = arith.constant 0 : index
    %31 = vector.load %arg1[%c0_19, %c0_20] : memref<36x512xf32, #tpu.memory_space<vmem>>, vector<36x512xf32>
    %cst_21 = arith.constant dense<0.000000e+00> : vector<8x512xf32>
    %32 = tpu.matmul %30, %31, %cst_21 {dimension_numbers = #tpu.dot_dimension_numbers<[1], [0], [0], [1], [0, 0, 1, 1], [], []>} : vector<8x36xf32>, vector<36x512xf32>, vector<8x512xf32> -> vector<8x512xf32>
    %c0_22 = arith.constant 0 : index
    %c0_23 = arith.constant 0 : index
    %33 = vector.load %arg6[%c0_22, %c0_23] : memref<8x1xf32, #tpu.memory_space<vmem>>, vector<8x1xf32>
    %34 = vector.broadcast %33 : vector<8x1xf32> to vector<8x512xf32>
    %35 = arith.addf %32, %34 : vector<8x512xf32>
    %cst_24 = arith.constant 0.000000e+00 : f32
    %36 = vector.broadcast %cst_24 : f32 to vector<8x512xf32>
    %37 = arith.maximumf %35, %36 : vector<8x512xf32>
    %cst_25 = arith.constant dense<0.000000e+00> : vector<8xf32>
    %38 = vector.multi_reduction <add>, %37, %cst_25 [1] : vector<8x512xf32> to vector<8xf32>
    %39 = vector.shape_cast %38 : vector<8xf32> to vector<8x1xf32>
    %cst_26 = arith.constant 5.120000e+02 : f32
    %40 = vector.broadcast %cst_26 : f32 to vector<8x1xf32>
    %41 = arith.divf %39, %40 : vector<8x1xf32>
    %42 = vector.broadcast %41 : vector<8x1xf32> to vector<8x512xf32>
    %43 = arith.subf %37, %42 : vector<8x512xf32>
    %44 = arith.mulf %43, %43 : vector<8x512xf32>
    %cst_27 = arith.constant dense<0.000000e+00> : vector<8xf32>
    %45 = vector.multi_reduction <add>, %44, %cst_27 [1] : vector<8x512xf32> to vector<8xf32>
    %46 = vector.shape_cast %45 : vector<8xf32> to vector<8x1xf32>
    %cst_28 = arith.constant 5.120000e+02 : f32
    %47 = vector.broadcast %cst_28 : f32 to vector<8x1xf32>
    %48 = arith.divf %46, %47 : vector<8x1xf32>
    %cst_29 = arith.constant 9.99999974E-6 : f32
    %49 = vector.broadcast %cst_29 : f32 to vector<8x1xf32>
    %50 = arith.addf %48, %49 : vector<8x1xf32>
    %51 = math.rsqrt %50 : vector<8x1xf32>
    %c0_30 = arith.constant 0 : index
    %c8 = arith.constant 8 : index
    %52 = vector.load %arg9[%c0_30, %c8] : memref<8x24xf32, #tpu.memory_space<vmem>>, vector<8x8xf32>
    %53 = tpu.transpose %51, [1, 0] : vector<8x1xf32> -> vector<1x8xf32>
    %54 = vector.broadcast %53 : vector<1x8xf32> to vector<8x8xf32>
    %55 = arith.mulf %52, %54 : vector<8x8xf32>
    %cst_31 = arith.constant dense<0.000000e+00> : vector<8x512xf32>
    %56 = tpu.matmul %55, %37, %cst_31 {dimension_numbers = #tpu.dot_dimension_numbers<[1], [0], [0], [1], [0, 0, 1, 1], [], []>} : vector<8x8xf32>, vector<8x512xf32>, vector<8x512xf32> -> vector<8x512xf32>
    %cst_32 = arith.constant dense<0.000000e+00> : vector<8x1xf32>
    %57 = tpu.matmul %55, %41, %cst_32 {dimension_numbers = #tpu.dot_dimension_numbers<[1], [0], [0], [1], [0, 0, 1, 1], [], []>} : vector<8x8xf32>, vector<8x1xf32>, vector<8x1xf32> -> vector<8x1xf32>
    %58 = arith.addf %26, %56 : vector<8x512xf32>
    %59 = arith.subf %29, %57 : vector<8x1xf32>
    %c0_33 = arith.constant 0 : index
    %c0_34 = arith.constant 0 : index
    %60 = vector.load %arg7[%c0_33, %c0_34] : memref<8x36xf32, #tpu.memory_space<vmem>>, vector<8x36xf32>
    %c0_35 = arith.constant 0 : index
    %c0_36 = arith.constant 0 : index
    %61 = vector.load %arg2[%c0_35, %c0_36] : memref<36x512xf32, #tpu.memory_space<vmem>>, vector<36x512xf32>
    %cst_37 = arith.constant dense<0.000000e+00> : vector<8x512xf32>
    %62 = tpu.matmul %60, %61, %cst_37 {dimension_numbers = #tpu.dot_dimension_numbers<[1], [0], [0], [1], [0, 0, 1, 1], [], []>} : vector<8x36xf32>, vector<36x512xf32>, vector<8x512xf32> -> vector<8x512xf32>
    %c0_38 = arith.constant 0 : index
    %c0_39 = arith.constant 0 : index
    %63 = vector.load %arg8[%c0_38, %c0_39] : memref<8x1xf32, #tpu.memory_space<vmem>>, vector<8x1xf32>
    %64 = vector.broadcast %63 : vector<8x1xf32> to vector<8x512xf32>
    %65 = arith.addf %62, %64 : vector<8x512xf32>
    %cst_40 = arith.constant 0.000000e+00 : f32
    %66 = vector.broadcast %cst_40 : f32 to vector<8x512xf32>
    %67 = arith.maximumf %65, %66 : vector<8x512xf32>
    %cst_41 = arith.constant dense<0.000000e+00> : vector<8xf32>
    %68 = vector.multi_reduction <add>, %67, %cst_41 [1] : vector<8x512xf32> to vector<8xf32>
    %69 = vector.shape_cast %68 : vector<8xf32> to vector<8x1xf32>
    %cst_42 = arith.constant 5.120000e+02 : f32
    %70 = vector.broadcast %cst_42 : f32 to vector<8x1xf32>
    %71 = arith.divf %69, %70 : vector<8x1xf32>
    %72 = vector.broadcast %71 : vector<8x1xf32> to vector<8x512xf32>
    %73 = arith.subf %67, %72 : vector<8x512xf32>
    %74 = arith.mulf %73, %73 : vector<8x512xf32>
    %cst_43 = arith.constant dense<0.000000e+00> : vector<8xf32>
    %75 = vector.multi_reduction <add>, %74, %cst_43 [1] : vector<8x512xf32> to vector<8xf32>
    %76 = vector.shape_cast %75 : vector<8xf32> to vector<8x1xf32>
    %cst_44 = arith.constant 5.120000e+02 : f32
    %77 = vector.broadcast %cst_44 : f32 to vector<8x1xf32>
    %78 = arith.divf %76, %77 : vector<8x1xf32>
    %cst_45 = arith.constant 9.99999974E-6 : f32
    %79 = vector.broadcast %cst_45 : f32 to vector<8x1xf32>
    %80 = arith.addf %78, %79 : vector<8x1xf32>
    %81 = math.rsqrt %80 : vector<8x1xf32>
    %c0_46 = arith.constant 0 : index
    %c16 = arith.constant 16 : index
    %82 = vector.load %arg9[%c0_46, %c16] : memref<8x24xf32, #tpu.memory_space<vmem>>, vector<8x8xf32>
    %83 = tpu.transpose %81, [1, 0] : vector<8x1xf32> -> vector<1x8xf32>
    %84 = vector.broadcast %83 : vector<1x8xf32> to vector<8x8xf32>
    %85 = arith.mulf %82, %84 : vector<8x8xf32>
    %cst_47 = arith.constant dense<0.000000e+00> : vector<8x512xf32>
    %86 = tpu.matmul %85, %67, %cst_47 {dimension_numbers = #tpu.dot_dimension_numbers<[1], [0], [0], [1], [0, 0, 1, 1], [], []>} : vector<8x8xf32>, vector<8x512xf32>, vector<8x512xf32> -> vector<8x512xf32>
    %cst_48 = arith.constant dense<0.000000e+00> : vector<8x1xf32>
    %87 = tpu.matmul %85, %71, %cst_48 {dimension_numbers = #tpu.dot_dimension_numbers<[1], [0], [0], [1], [0, 0, 1, 1], [], []>} : vector<8x8xf32>, vector<8x1xf32>, vector<8x1xf32> -> vector<8x1xf32>
    %88 = arith.addf %58, %86 : vector<8x512xf32>
    %89 = arith.subf %59, %87 : vector<8x1xf32>
    %90 = vector.broadcast %89 : vector<8x1xf32> to vector<8x512xf32>
    %91 = arith.addf %88, %90 : vector<8x512xf32>
    %c0_49 = arith.constant 0 : index
    %c0_50 = arith.constant 0 : index
    %92 = vector.load %arg11[%c0_49, %c0_50] : memref<8x512xf32, #tpu.memory_space<vmem>>, vector<8x512xf32>
    tpu.vector_store %arg11[%c0_49, %c0_50], %91 {strides = array<i32>} : memref<8x512xf32, #tpu.memory_space<vmem>>, vector<8x512xf32>,
    return
  }
}

</mosaic_0001>

<bundles_post_ra>
// kernel: aspp_forward.1
= control target key start
LH: loop header
LB: loop body
LE: loop exit
PB: predicated region body
PF: predicated region fallthrough
CT: control target
= control target key end

     0   :  { %vm69_vm0 = vcmask 1043456   ;;  %v1529_v3 = vmov 0.0   ;;  %vm65_vm1 = vcmask 293888   ;;  %v1530_v26 = vmov 0   ;;  %s1533_s22 = smov 120   ;;  %s1929_s0 = inlined_call_operand.vmem [shape: f32[36,512], index: 0, kind: input, shape index: {}]   ;;  %s1930_s3 = inlined_call_operand.vmem [shape: f32[8,36], index: 3, kind: input, shape index: {}]   ;;  %s1931_s1 = inlined_call_operand.vmem [shape: f32[36,512], index: 1, kind: input, shape index: {}]   ;;  %s1932_s4 = inlined_call_operand.vmem [shape: f32[8,1], index: 4, kind: input, shape index: {}]   ;;  %s1933_s5 = inlined_call_operand.vmem [shape: f32[8,36], index: 5, kind: input, shape index: {}]   ;;  %s1934_s6 = inlined_call_operand.vmem [shape: f32[8,1], index: 6, kind: input, shape index: {}]   ;;  %s1935_s9 = inlined_call_operand.vmem [shape: f32[8,24], index: 9, kind: input, shape index: {}]   ;;  %s1936_s8 = inlined_call_operand.vmem [shape: f32[8,1], index: 8, kind: input, shape index: {}]   ;;  %s1937_s2 = inlined_call_operand.vmem [shape: f32[36,512], index: 2, kind: input, shape index: {}]   ;;  %s1938_s7 = inlined_call_operand.vmem [shape: f32[8,36], index: 7, kind: input, shape index: {}]   ;;  %s1939_s10 = inlined_call_operand.vmem [shape: f32[8,1], index: 10, kind: input, shape index: {}]   ;;  %s1940_s11 = inlined_call_operand.vmem [shape: f32[8,512], index: 11, kind: output, shape index: {}]  }
   0x1   :  { %v56_v0 = vld [vmem:[%s1929_s0 + $0x88] sm:$0xf]  ;;  %v58_v1 = vld [vmem:[%s1929_s0 + $0x98] sm:$0xf]  ;;  %v55_v2 = vld [vmem:[%s1929_s0 + $0x80] sm:$0xf]  ;;  %146 = vmatprep.mubr.f32.mxu0 %v1529_v3  ;;  %217 = vmatprep.mubr.f32.mxu1 %v1529_v3 }
   0x2   :  { %1466 = vmatprep.subr.msk.mxu0 %vm69_vm0, %v56_v0  ;;  %1469 = vmatprep.subr.msk.mxu1 %vm69_vm0, %v58_v1  ;;  %v57_v4 = vld [vmem:[%s1929_s0 + $0x90] sm:$0xf]  ;;  %v52_v5 = vld [vmem:[%s1929_s0 + $0x68] sm:$0xff]  ;;  %v54_v6 = vld [vmem:[%s1929_s0 + $0x78] sm:$0xff]  ;;  %vm1531_vm2 = vmmov 0   ;;  %vm289_vm3 = vcmask 64512  }
   0x3   :  { %1467 = vmatpush1.msk.msra.mxu0 %vm69_vm0, %v55_v2  ;;  %1470 = vmatpush1.msk.msra.mxu1 %vm69_vm0, %v57_v4  ;;  %v51_v7 = vld [vmem:[%s1929_s0 + $0x60] sm:$0xff]  ;;  %v53_v8 = vld [vmem:[%s1929_s0 + $0x70] sm:$0xff]  ;;  %v48_v9 = vld [vmem:[%s1929_s0 + $0x48] sm:$0xff] }
   0x4   :  { %106 = vmatprep.subr.mxu0 %v52_v5  ;;  %177 = vmatprep.subr.mxu1 %v54_v6  ;;  %v50_v10 = vld [vmem:[%s1929_s0 + $0x58] sm:$0xff]  ;;  %v47_v11 = vld [vmem:[%s1929_s0 + $0x40] sm:$0xff]  ;;  %v49_v12 = vld [vmem:[%s1929_s0 + $0x50] sm:$0xff] }
   0x5   :  { %107 = vmatpush1.msra.mxu0 %v51_v7  ;;  %178 = vmatpush1.msra.mxu1 %v53_v8  ;;  %v44_v13 = vld [vmem:[%s1929_s0 + $0x28] sm:$0xff]  ;;  %v46_v14 = vld [vmem:[%s1929_s0 + $0x38] sm:$0xff]  ;;  %v43_v15 = vld [vmem:[%s1929_s0 + $0x20] sm:$0xff] }
   0x6   :  { %108 = vmatprep.subr.mxu0 %v48_v9  ;;  %179 = vmatprep.subr.mxu1 %v50_v10  ;;  %v45_v16 = vld [vmem:[%s1929_s0 + $0x30] sm:$0xff]  ;;  %v40_v17 = vld [vmem:[%s1929_s0 + $0x8] sm:$0xff]  ;;  %v42_v18 = vld [vmem:[%s1929_s0 + $0x18] sm:$0xff] }
   0x7   :  { %109 = vmatpush1.msra.mxu0 %v47_v11  ;;  %180 = vmatpush1.msra.mxu1 %v49_v12  ;;  %v39_v19 = vld [vmem:[%s1929_s0] sm:$0xff]  ;;  %v41_v20 = vld [vmem:[%s1929_s0 + $0x10] sm:$0xff]  ;;  %v383_v22 = vld [vmem:[%s1931_s1 + $0x88] sm:$0xf] }
   0x8   :  { %110 = vmatprep.subr.mxu0 %v44_v13  ;;  %181 = vmatprep.subr.mxu1 %v46_v14  ;;  %v38_v21 = vld [vmem:[%s1930_s3] sm:$0xff]  ;;  %v379_v25 = vld [vmem:[%s1931_s1 + $0x68] sm:$0xff]  ;;  %v385_v13 = vld [vmem:[%s1931_s1 + $0x98] sm:$0xf]  ;;  %v284_v14 = vlaneseq }
   0x9   :  { %111 = vmatpush1.msra.mxu0 %v43_v15  ;;  %182 = vmatpush1.msra.mxu1 %v45_v16  ;;  %v59_v23 = vld [vmem:[%s1932_s4] sm:$0xff]  ;;  %v375_v28 = vld [vmem:[%s1931_s1 + $0x48] sm:$0xff] }
   0xa   :  { %112 = vmatprep.subr.mxu0 %v40_v17  ;;  %183 = vmatprep.subr.mxu1 %v42_v18  ;;  %v382_v24 = vld [vmem:[%s1931_s1 + $0x80] sm:$0xf]  ;;  %v371_v30 = vld [vmem:[%s1931_s1 + $0x28] sm:$0xff]  ;;  %v285_v15 = vshrl.u32 %v284_v14, 7  ;;  %v988_v14 = vld [vmem:[%s1937_s2 + $0x58] sm:$0xff] }
   0xb   :  { %113 = vmatpush1.msra.mxu0 %v39_v19  ;;  %184 = vmatpush1.msra.mxu1 %v41_v20  ;;  %v378_v27 = vld [vmem:[%s1931_s1 + $0x60] sm:$0xff]  ;;  %v367_v32 = vld [vmem:[%s1931_s1 + $0x8] sm:$0xff] }
   0xc   :  { %1468 = vmatmul.mubr.msk.f32.vlgmr.msra.gmra.mxu0 %vm65_vm1, %v38_v21  ;;  %1471 = vmatmul.mubr.msk.f32.vlgmr.msra.gmra.mxu1 %vm65_vm1, %v38_v21  ;;  %v374_v29 = vld [vmem:[%s1931_s1 + $0x40] sm:$0xff]  ;;  %v1746_v16 = vsub.s32 0, %v285_v15  ;;  %v384_v21 = vld [vmem:[%s1931_s1 + $0x90] sm:$0xf] }
   0xd   :  { %1521 = vset.pattern.permute.xlu0 %v1530_v26  ;;  %1473 = vmatprep.subr.msk.mxu1 %vm69_vm0, %v383_v22  ;;  %v370_v31 = vld [vmem:[%s1931_s1 + $0x20] sm:$0xff]  ;;  %v381_v22 = vld [vmem:[%s1931_s1 + $0x78] sm:$0xff] }
   0xe   :  { %62 = vperm.xlu0 %1521, %v59_v23   ;;  %1474 = vmatpush1.msk.msra.mxu1 %vm69_vm0, %v382_v24  ;;  %v366_v33 = vld [vmem:[%s1931_s1] sm:$0xff]  ;;  %v380_v23 = vld [vmem:[%s1931_s1 + $0x70] sm:$0xff]  ;;  %v377_v24 = vld [vmem:[%s1931_s1 + $0x58] sm:$0xff] }
   0xf   :  { %431 = vmatprep.subr.mxu1 %v379_v25  ;;  %471 = vmatprep.mubr.f32.mxu1 %v1529_v3  ;;  %v1708_v34 = vld [vmem:[%s1933_s5] sm:$0xff]  ;;  %v376_v25 = vld [vmem:[%s1931_s1 + $0x50] sm:$0xff] }
  0x10   :  { %432 = vmatpush1.msra.mxu1 %v378_v27  ;;  %1499 = vmatprep.subr.mxu0 %v1529_v3  ;;  %v386_v51 = vld [vmem:[%s1934_s6] sm:$0xff]  ;;  %v372_v27 = vld [vmem:[%s1931_s1 + $0x30] sm:$0xff] }
  0x11   :  { %433 = vmatprep.subr.mxu1 %v375_v28  ;;  %1501 = vmatprep.mubr.msk.f32.mxu0 %vm1531_vm2, %v1529_v3  ;;  %v1751_v17 = vld [vmem:[%s1935_s9] sm:$0xff]  ;;  %v369_v28 = vld [vmem:[%s1931_s1 + $0x18] sm:$0xff] }
  0x12   :  { %434 = vmatpush1.msra.mxu1 %v374_v29  ;;  %v368_v29 = vld [vmem:[%s1931_s1 + $0x10] sm:$0xff]  ;;  %v977_v15 = vld [vmem:[%s1937_s2] sm:$0xff] }
  0x13   :  { %435 = vmatprep.subr.mxu1 %v371_v30 }
  0x14   :  { %436 = vmatpush1.msra.mxu1 %v370_v31 }
  0x15   :  { %437 = vmatprep.subr.mxu1 %v367_v32 }
  0x16   :  { %438 = vmatpush1.msra.mxu1 %v366_v33 }
  0x17   :  { %1475 = vmatmul.mubr.msk.f32.vlgmr.msra.gmra.mxu1 %vm65_vm1, %v1708_v34 }
  0x18   :  { %685 = vmatprep.mubr.f32.mxu1 %v1529_v3 }
  0x89   :  { %v63_v35 = vpop.permute.xlu0 %62 }
  0xcc   :  { %v148_v36 = vpop.f32.mrf.mxu0  ;;  %v219_v37 = vpop.f32.mrf.mxu1 }
  0xcd   :  { %v149_v38 = vadd.f32 %v148_v36, %v63_v35  ;;  %v220_v41 = vadd.f32 %v219_v37, %v63_v35 }
  0xce   :  { %v150_v39 = vpop.f32.mrf.mxu0  ;;  %v221_v40 = vpop.f32.mrf.mxu1 }
  0xcf   :  { %v151_v42 = vadd.f32 %v150_v39, %v63_v35  ;;  %v1713_v43 = vmax.f32 %v149_v38, 0.0  ;;  %v222_v45 = vadd.f32 %v221_v40, %v63_v35  ;;  %v1717_v46 = vmax.f32 %v220_v41, 0.0 }
  0xd1   :  { %v1715_v44 = vmax.f32 %v151_v42, 0.0  ;;  %v1721_v48 = vmax.f32 %v222_v45, 0.0 }
  0xd3   :  { %v228_v47 = vadd.f32 %v1715_v44, %v1713_v43 }
  0xd5   :  { %v229_v49 = vadd.f32 %v228_v47, %v1717_v46 }
  0xd7   :  { %v230_v50 = vadd.f32 %v229_v49, %v1721_v48  ;;  %v473_v54 = vpop.f32.mrf.mxu1 }
  0xd9   :  { %231 = vadd.xlane.f32.xlu0 %v230_v50  ;;  %v475_v61 = vpop.f32.mrf.mxu1 }
  0xef   :  { %389 = vperm.xlu0 %1521, %v386_v51  }
 0x162   :  { %v232_v52 = vpop.xlane.xlu0 %231 }
 0x163   :  { %v234_v53 = vmul.f32 0.001953125, %v232_v52 }
 0x165   :  { %1500 = vmatpush3.msra.mxu0 %v234_v53  ;;  %v235_v55 = vsub.f32 %v1713_v43, %v234_v53  ;;  %v236_v56 = vsub.f32 %v1715_v44, %v234_v53  ;;  %v237_v57 = vsub.f32 %v1717_v46, %v234_v53  ;;  %v238_v58 = vsub.f32 %v1721_v48, %v234_v53 }
 0x166   :  { %1476 = vmatprep.subr.msk.mxu0 %vm69_vm0, %v385_v13  ;;  %v978_v13 = vld [vmem:[%s1937_s2 + $0x8] sm:$0xff] }
 0x167   :  { %v239_v59 = vmul.f32 %v235_v55, %v235_v55  ;;  %v240_v60 = vmul.f32 %v236_v56, %v236_v56  ;;  %v241_v62 = vmul.f32 %v237_v57, %v237_v57  ;;  %v242_v2 = vmul.f32 %v238_v58, %v238_v58 }
 0x169   :  { %v243_v63 = vadd.f32 %v240_v60, %v239_v59 }
 0x16a   :  { %v390_v0 = vpop.permute.xlu0 %389 }
 0x16b   :  { %v474_v1 = vadd.f32 %v473_v54, %v390_v0  ;;  %v244_v4 = vadd.f32 %v243_v63, %v241_v62  ;;  %v476_v5 = vadd.f32 %v475_v61, %v390_v0 }
 0x16d   :  { %v1732_v6 = vmax.f32 %v474_v1, 0.0  ;;  %v245_v7 = vadd.f32 %v244_v4, %v242_v2  ;;  %v1734_v8 = vmax.f32 %v476_v5, 0.0  ;;  %v997_v1 = vld [vmem:[%s1936_s8] sm:$0xff]  ;;  %v994_v4 = vld [vmem:[%s1937_s2 + $0x88] sm:$0xf] }
 0x16e   :  { %v993_v5 = vld [vmem:[%s1937_s2 + $0x80] sm:$0xf] }
 0x16f   :  { %246 = vadd.xlane.f32.xlu1 %v245_v7  ;;  %651 = vmatprep.subr.mxu1 %v1734_v8  ;;  %v553_v38 = vadd.f32 %v1734_v8, %v1732_v6  ;;  %v986_v7 = vld [vmem:[%s1937_s2 + $0x48] sm:$0xff] }
 0x170   :  { %652 = vmatpush1.msra.mxu1 %v1732_v6 }
 0x171   :  { %1504 = vmatprep.subr.mxu1 %v1529_v3 }
 0x1f8   :  { %v247_v9 = vpop.xlane.xlu1 %246 }
 0x1f9   :  { %v248_v10 = vmul.f32 0.001953125, %v247_v9  ;;  %v995_v9 = vld [vmem:[%s1937_s2 + $0x90] sm:$0xf] }
 0x1fb   :  { %v249_v11 = vadd.f32 1e-05, %v248_v10  ;;  %v992_v10 = vld [vmem:[%s1937_s2 + $0x78] sm:$0xff] }
 0x1fd   :  { %1523 = vrsqrt.f32 %v249_v11  ;;  %v981_v11 = vld [vmem:[%s1937_s2 + $0x20] sm:$0xff] }
 0x20a   :  { %v1524_v12 = vpop.eup %1523 }
 0x20b   :  { %252 = vxpose.xlu1.b32.start.end [1/1] (short) (narrow) %v1524_v12, 8  ;;  %v991_v12 = vld [vmem:[%s1937_s2 + $0x70] sm:$0xff] }
 0x229   :  { %1522 = vset.pattern.permute.xlu1 %v1530_v26  ;;  %v373_v26 = vld [vmem:[%s1931_s1 + $0x38] sm:$0xff]  ;;  %s1532_s1 = smov 8  }
 0x287   :  { %v268_v18 = vpop.trf.xlu1 }
 0x288   :  { %v287_v19 = vrot.slane %v268_v18, %v1746_v16  ;;  %v987_v18 = vld [vmem:[%s1937_s2 + $0x50] sm:$0xff] }
 0x28a   :  { %v1755_v20 = vmul.f32 %v287_v19, %v1751_v17  ;;  %v976_v19 = vld [vmem:[%s1938_s7] sm:$0xff] }
 0x28c   :  { %1502 = vmatmul.mubr.msk.f32.vlgmr.msra.gmra.mxu0 %vm289_vm3, %v1755_v20 }
 0x28d   :  { %1477 = vmatpush1.msk.msra.mxu0 %vm69_vm0, %v384_v21  ;;  %542 = vmatprep.mubr.f32.mxu0 %v1529_v3  ;;  %v983_v21 = vld [vmem:[%s1937_s2 + $0x30] sm:$0xff] }
 0x28e   :  { %502 = vmatprep.subr.mxu0 %v381_v22  ;;  %v980_v22 = vld [vmem:[%s1937_s2 + $0x18] sm:$0xff] }
 0x28f   :  { %503 = vmatpush1.msra.mxu0 %v380_v23  ;;  %v979_v23 = vld [vmem:[%s1937_s2 + $0x10] sm:$0xff] }
 0x290   :  { %504 = vmatprep.subr.mxu0 %v377_v24  ;;  %v363_v24 = vld [vmem:[%s1939_s10] sm:$0xff]  ;;  %s1535_s10 = smov 112  }
 0x291   :  { %505 = vmatpush1.msra.mxu0 %v376_v25 }
 0x292   :  { %506 = vmatprep.subr.mxu0 %v373_v26 }
 0x293   :  { %507 = vmatpush1.msra.mxu0 %v372_v27 }
 0x294   :  { %508 = vmatprep.subr.mxu0 %v369_v28 }
 0x295   :  { %509 = vmatpush1.msra.mxu0 %v368_v29 }
 0x296   :  { %1478 = vmatmul.mubr.msk.f32.vlgmr.msra.gmra.mxu0 %vm65_vm1, %v1708_v34 }
 0x297   :  { %756 = vmatprep.mubr.f32.mxu0 %v1529_v3 }
 0x34c   :  { %v1791_v30 = vpop.f32.mrf.mxu0 }
 0x34d   :  { %v364_v29 = vsub.f32 %v363_v24, %v1791_v30 }
 0x34e   :  { %v1503_v31 = vpop.f32.mrf.mxu0 }
 0x356   :  { %v544_v32 = vpop.f32.mrf.mxu0 }
 0x357   :  { %v545_v33 = vadd.f32 %v544_v32, %v390_v0 }
 0x358   :  { %v546_v35 = vpop.f32.mrf.mxu0 }
 0x359   :  { %v551_v36 = vmax.f32 %v545_v33, 0.0  ;;  %v547_v37 = vadd.f32 %v546_v35, %v390_v0 }
 0x35b   :  { %v552_v39 = vmax.f32 %v547_v37, 0.0  ;;  %v554_v40 = vadd.f32 %v553_v38, %v551_v36 }
 0x35d   :  { %722 = vmatprep.subr.mxu0 %v552_v39  ;;  %v555_v41 = vadd.f32 %v554_v40, %v552_v39 }
 0x35e   :  { %723 = vmatpush1.msra.mxu0 %v551_v36 }
 0x35f   :  { %863 = vmatprep.subr.mxu0 %v1715_v44  ;;  %556 = vadd.xlane.f32.xlu1 %v555_v41 }
 0x3e8   :  { %v557_v34 = vpop.xlane.xlu1 %556 }
 0x3e9   :  { %v558_v42 = vmul.f32 0.001953125, %v557_v34 }
 0x3eb   :  { %v559_v45 = vsub.f32 %v1732_v6, %v558_v42  ;;  %v560_v47 = vsub.f32 %v1734_v8, %v558_v42  ;;  %v561_v49 = vsub.f32 %v551_v36, %v558_v42  ;;  %v562_v50 = vsub.f32 %v552_v39, %v558_v42  ;;  %v990_v6 = vld [vmem:[%s1937_s2 + $0x68] sm:$0xff]  ;;  %v985_v8 = vld [vmem:[%s1937_s2 + $0x40] sm:$0xff] }
 0x3ed   :  { %v563_v51 = vmul.f32 %v559_v45, %v559_v45  ;;  %v564_v52 = vmul.f32 %v560_v47, %v560_v47  ;;  %v565_v53 = vmul.f32 %v561_v49, %v561_v49  ;;  %v566_v55 = vmul.f32 %v562_v50, %v562_v50 }
 0x3ef   :  { %v567_v54 = vadd.f32 %v564_v52, %v563_v51 }
 0x3f1   :  { %v568_v56 = vadd.f32 %v567_v54, %v565_v53 }
 0x3f3   :  { %v569_v57 = vadd.f32 %v568_v56, %v566_v55 }
 0x3f5   :  { %570 = vadd.xlane.f32.xlu0 %v569_v57 }
 0x47e   :  { %v571_v58 = vpop.xlane.xlu0 %570 }
 0x47f   :  { %v572_v59 = vmul.f32 0.001953125, %v571_v58 }
 0x481   :  { %v573_v44 = vadd.f32 1e-05, %v572_v59 }
 0x483   :  { %1525 = vrsqrt.f32 %v573_v44 }
 0x490   :  { %v1526_v60 = vpop.eup %1525 }
 0x491   :  { %575 = vxpose.xlu0.b32.start.end [1/1] (short) (narrow) %v1526_v60, 8 }
 0x50d   :  { %v591_v61 = vpop.trf.xlu0 }
 0x50e   :  { %v610_v62 = vrot.slane %v591_v61, %v1746_v16 }
 0x510   :  { %612 = vrot.lane.b32.xlu1 %v610_v62, %s1532_s1 }
 0x582   :  { %v613_v63 = vpop.permute.xlu1 %612 }
 0x583   :  { %v615_v0 = vmul.f32 %v613_v63, %v1751_v17 }
 0x585   :  { %617 = vrot.lane.b32.xlu1 %v615_v0, %s1533_s22 }
 0x589   :  { %1000 = vperm.xlu1 %1522, %v997_v1  }
 0x5f7   :  { %v618_v2 = vpop.permute.xlu1 %617 }
 0x5f8   :  { %1479 = vmatmul.mubr.msk.f32.vlgmr.msra.gmra.mxu1 %vm289_vm3, %v618_v2  ;;  %1480 = vmatmul.mubr.msk.f32.vlgmr.msra.gmra.mxu0 %vm289_vm3, %v618_v2 }
 0x5f9   :  { %1505 = vmatpush3.msra.mxu1 %v558_v42  ;;  %864 = vmatpush1.msra.mxu0 %v1713_v43  ;;  %v989_v43 = vld [vmem:[%s1937_s2 + $0x60] sm:$0xff] }
 0x5fa   :  { %934 = vmatprep.subr.mxu1 %v1721_v48  ;;  %1506 = vmatprep.mubr.msk.f32.mxu1 %vm1531_vm2, %v1529_v3  ;;  %v996_v48 = vld [vmem:[%s1937_s2 + $0x98] sm:$0xf] }
 0x5fb   :  { %897 = vmatprep.mubr.f32.mxu0 %v1529_v3  ;;  %1484 = vmatprep.subr.msk.mxu0 %vm69_vm0, %v994_v4 }
 0x5fc   :  { %1507 = vmatmul.mubr.msk.f32.vlgmr.msra.gmra.mxu1 %vm289_vm3, %v618_v2  ;;  %1482 = vmatmul.mubr.msk.f32.vlgmr.msra.gmra.mxu0 %vm289_vm3, %v1755_v20 }
 0x5fd   :  { %935 = vmatpush1.msra.mxu1 %v1717_v46  ;;  %1485 = vmatpush1.msk.msra.mxu0 %vm69_vm0, %v993_v5  ;;  %v982_v46 = vld [vmem:[%s1937_s2 + $0x28] sm:$0xff] }
 0x5fe   :  { %1042 = vmatprep.subr.mxu0 %v990_v6  ;;  %968 = vmatprep.mubr.f32.mxu1 %v1529_v3 }
 0x5ff   :  { %1043 = vmatpush1.msra.mxu0 %v989_v43  ;;  %1487 = vmatprep.subr.msk.mxu1 %vm69_vm0, %v996_v48 }
 0x600   :  { %1044 = vmatprep.subr.mxu0 %v986_v7  ;;  %1483 = vmatmul.mubr.msk.f32.vlgmr.msra.gmra.mxu1 %vm289_vm3, %v1755_v20  ;;  %v984_v20 = vld [vmem:[%s1937_s2 + $0x38] sm:$0xff]  ;;  %s1534_s2 = smov 16  }
 0x601   :  { %1045 = vmatpush1.msra.mxu0 %v985_v8  ;;  %1488 = vmatpush1.msk.msra.mxu1 %vm69_vm0, %v995_v9 }
 0x602   :  { %1046 = vmatprep.subr.mxu0 %v982_v46  ;;  %1113 = vmatprep.subr.mxu1 %v992_v10 }
 0x603   :  { %1047 = vmatpush1.msra.mxu0 %v981_v11  ;;  %1114 = vmatpush1.msra.mxu1 %v991_v12 }
 0x604   :  { %1048 = vmatprep.subr.mxu0 %v978_v13  ;;  %1115 = vmatprep.subr.mxu1 %v988_v14  ;;  %v1001_v42 = vpop.permute.xlu1 %1000 }
 0x605   :  { %1049 = vmatpush1.msra.mxu0 %v977_v15  ;;  %1082 = vmatprep.mubr.f32.mxu0 %v1529_v3 }
 0x606   :  { %1116 = vmatpush1.msra.mxu1 %v987_v18  ;;  %1486 = vmatmul.mubr.msk.f32.vlgmr.msra.gmra.mxu0 %vm65_vm1, %v976_v19 }
 0x607   :  { %1117 = vmatprep.subr.mxu1 %v984_v20  ;;  %1153 = vmatprep.mubr.f32.mxu1 %v1529_v3 }
 0x608   :  { %1118 = vmatpush1.msra.mxu1 %v983_v21  ;;  %1296 = vmatprep.mubr.f32.mxu0 %v1529_v3 }
 0x609   :  { %1119 = vmatprep.subr.mxu1 %v980_v22 }
 0x60a   :  { %1120 = vmatpush1.msra.mxu1 %v979_v23 }
 0x60b   :  { %1489 = vmatmul.mubr.msk.f32.vlgmr.msra.gmra.mxu1 %vm65_vm1, %v976_v19 }
 0x60c   :  { %1367 = vmatprep.mubr.f32.mxu1 %v1529_v3 }
 0x6b8   :  { %v687_v25 = vpop.f32.mrf.mxu1  ;;  %v758_v26 = vpop.f32.mrf.mxu0 }
 0x6ba   :  { %v689_v27 = vpop.f32.mrf.mxu1  ;;  %v760_v28 = vpop.f32.mrf.mxu0 }
 0x6bc   :  { %v829_v31 = vpop.f32.mrf.mxu1  ;;  %v899_v32 = vpop.f32.mrf.mxu0 }
 0x6bd   :  { %v1894_v33 = vsub.f32 %v364_v29, %v829_v31  ;;  %v1896_v35 = vadd.f32 %v899_v32, %v687_v25 }
 0x6be   :  { %v1508_v36 = vpop.f32.mrf.mxu1  ;;  %v901_v37 = vpop.f32.mrf.mxu0 }
 0x6bf   :  { %v1898_v38 = vadd.f32 %v901_v37, %v689_v27 }
 0x6c0   :  { %v970_v39 = vpop.f32.mrf.mxu1 }
 0x6c1   :  { %v1900_v40 = vadd.f32 %v970_v39, %v758_v26 }
 0x6c2   :  { %v972_v41 = vpop.f32.mrf.mxu1 }
 0x6c3   :  { %v1902_v34 = vadd.f32 %v972_v41, %v760_v28 }
 0x6c6   :  { %v1084_v45 = vpop.f32.mrf.mxu0 }
 0x6c7   :  { %v1085_v47 = vadd.f32 %v1084_v45, %v1001_v42 }
 0x6c8   :  { %v1086_v30 = vpop.f32.mrf.mxu0 }
 0x6c9   :  { %v1087_v49 = vadd.f32 %v1086_v30, %v1001_v42  ;;  %v1160_v50 = vmax.f32 %v1085_v47, 0.0 }
 0x6cb   :  { %v1161_v51 = vmax.f32 %v1087_v49, 0.0  ;;  %v1155_v52 = vpop.f32.mrf.mxu1 }
 0x6cc   :  { %v1156_v53 = vadd.f32 %v1155_v52, %v1001_v42 }
 0x6cd   :  { %v1157_v54 = vpop.f32.mrf.mxu1  ;;  %1262 = vmatprep.subr.mxu0 %v1161_v51  ;;  %v1164_v55 = vadd.f32 %v1161_v51, %v1160_v50 }
 0x6ce   :  { %v1162_v56 = vmax.f32 %v1156_v53, 0.0  ;;  %v1158_v57 = vadd.f32 %v1157_v54, %v1001_v42  ;;  %1263 = vmatpush1.msra.mxu0 %v1160_v50 }
 0x6cf   :  { %1509 = vmatprep.subr.mxu0 %v1529_v3 }
 0x6d0   :  { %v1163_v58 = vmax.f32 %v1158_v57, 0.0  ;;  %v1165_v59 = vadd.f32 %v1164_v55, %v1162_v56 }
 0x6d2   :  { %1333 = vmatprep.subr.mxu1 %v1163_v58  ;;  %v1166_v44 = vadd.f32 %v1165_v59, %v1163_v58 }
 0x6d3   :  { %1334 = vmatpush1.msra.mxu1 %v1162_v56 }
 0x6d4   :  { %1167 = vadd.xlane.f32.xlu1 %v1166_v44 }
 0x75d   :  { %v1168_v60 = vpop.xlane.xlu1 %1167 }
 0x75e   :  { %v1169_v61 = vmul.f32 0.001953125, %v1168_v60 }
 0x760   :  { %v1170_v62 = vsub.f32 %v1160_v50, %v1169_v61  ;;  %v1171_v63 = vsub.f32 %v1161_v51, %v1169_v61  ;;  %v1172_v0 = vsub.f32 %v1162_v56, %v1169_v61  ;;  %v1173_v1 = vsub.f32 %v1163_v58, %v1169_v61 }
 0x762   :  { %v1174_v2 = vmul.f32 %v1170_v62, %v1170_v62  ;;  %v1175_v4 = vmul.f32 %v1171_v63, %v1171_v63  ;;  %v1176_v5 = vmul.f32 %v1172_v0, %v1172_v0  ;;  %v1177_v43 = vmul.f32 %v1173_v1, %v1173_v1 }
 0x764   :  { %v1178_v6 = vadd.f32 %v1175_v4, %v1174_v2 }
 0x766   :  { %v1179_v48 = vadd.f32 %v1178_v6, %v1176_v5 }
 0x768   :  { %v1180_v7 = vadd.f32 %v1179_v48, %v1177_v43 }
 0x76a   :  { %1181 = vadd.xlane.f32.xlu0 %v1180_v7 }
 0x7f3   :  { %v1182_v8 = vpop.xlane.xlu0 %1181 }
 0x7f4   :  { %v1183_v9 = vmul.f32 0.001953125, %v1182_v8 }
 0x7f6   :  { %v1184_v46 = vadd.f32 1e-05, %v1183_v9 }
 0x7f8   :  { %1527 = vrsqrt.f32 %v1184_v46 }
 0x805   :  { %v1528_v10 = vpop.eup %1527 }
 0x806   :  { %1186 = vxpose.xlu1.b32.start.end [1/1] (short) (narrow) %v1528_v10, 8 }
 0x882   :  { %v1202_v11 = vpop.trf.xlu1 }
 0x883   :  { %v1221_v12 = vrot.slane %v1202_v11, %v1746_v16 }
 0x885   :  { %1223 = vrot.lane.b32.xlu0 %v1221_v12, %s1534_s2 }
 0x8f7   :  { %v1224_v13 = vpop.permute.xlu0 %1223 }
 0x8f8   :  { %v1226_v14 = vmul.f32 %v1224_v13, %v1751_v17 }
 0x8fa   :  { %1228 = vrot.lane.b32.xlu0 %v1226_v14, %s1535_s10 }
 0x96c   :  { %v1229_v15 = vpop.permute.xlu0 %1228 }
 0x96d   :  { %1490 = vmatmul.mubr.msk.f32.vlgmr.msra.gmra.mxu0 %vm289_vm3, %v1229_v15  ;;  %1491 = vmatmul.mubr.msk.f32.vlgmr.msra.gmra.mxu1 %vm289_vm3, %v1229_v15 }
 0x96e   :  { %1510 = vmatpush3.msra.mxu0 %v1169_v61  ;;  %1511 = vmatprep.mubr.msk.f32.mxu0 %vm1531_vm2, %v1529_v3 }
 0x971   :  { %1512 = vmatmul.mubr.msk.f32.vlgmr.msra.gmra.mxu0 %vm289_vm3, %v1229_v15 }
 0xa2d   :  { %v1298_v18 = vpop.f32.mrf.mxu0  ;;  %v1369_v23 = vpop.f32.mrf.mxu1 }
 0xa2e   :  { %v1444_v16 = vadd.f32 %v1298_v18, %v1896_v35  ;;  %v1446_v25 = vadd.f32 %v1369_v23, %v1900_v40 }
 0xa2f   :  { %v1300_v19 = vpop.f32.mrf.mxu0  ;;  %v1371_v24 = vpop.f32.mrf.mxu1 }
 0xa30   :  { %v1445_v20 = vadd.f32 %v1300_v19, %v1898_v38  ;;  %v1447_v26 = vadd.f32 %v1371_v24, %v1902_v34 }
 0xa31   :  { %v1440_v17 = vpop.f32.mrf.mxu0 }
 0xa32   :  { %v1448_v21 = vsub.f32 %v1894_v33, %v1440_v17 }
 0xa33   :  { %v1513_v22 = vpop.f32.mrf.mxu0 }
 0xa34   :  { %1451 = vperm.xlu0 %1521, %v1448_v21  }
 0xaaf   :  { %v1452_v3 = vpop.permute.xlu0 %1451 }
 0xab0   :  { %v1454_v27 = vadd.f32 %v1452_v3, %v1444_v16  ;;  %v1455_v28 = vadd.f32 %v1452_v3, %v1445_v20  ;;  %v1456_v29 = vadd.f32 %v1452_v3, %v1446_v25  ;;  %v1457_v31 = vadd.f32 %v1452_v3, %v1447_v26 }
 0xab2   :  { %1458 = vst [vmem:[%s1940_s11] sm:$0xff] %v1454_v27  ;;  %1459 = vst [vmem:[%s1940_s11 + $0x8] sm:$0xff] %v1455_v28 }
 0xab3   :  { %1460 = vst [vmem:[%s1940_s11 + $0x10] sm:$0xff] %v1456_v29  ;;  %1461 = vst [vmem:[%s1940_s11 + $0x18] sm:$0xff] %v1457_v31 }

</bundles_post_ra>
